<compile_context>
chip_gen: v7x
topology: tpu7x:2x2x1
jax: 0.10.0
libtpu: 0.0.40
codegen_flags: <defaults>
</compile_context>

<pallas_src>
import jax
import jax.numpy as jnp
from jax.experimental import pallas as pl
from jax.experimental.pallas import tpu as pltpu


def _round_up(x, m):
    return (x + m - 1) // m * m


def _num_tensorcores():
    # v7x exposes 2 TensorCores per device; v5e/v6e have 1.
    try:
        kind = jax.devices()[0].device_kind.lower()
    except Exception:
        return 1
    return 2 if ("v7" in kind or "7x" in kind) else 1


def _choose_batch_tile(B, num_tc):
    # Enough grid steps to feed every TensorCore ("parallel" megacore axis),
    # balanced tiles for awkward batch sizes, <=512 rows per tile, rounded to
    # the 16-row bf16 sublane tile.
    steps = max(num_tc, pl.cdiv(B, 512))
    return min(_round_up(pl.cdiv(B, steps), 16), 512)


def _actor_kernel(x_ref, w1_ref, b1_ref, w2_ref, b2_ref, w3_ref, b3_ref, o_ref):
    # fc1 + ReLU   (cast f32 state -> bf16 on-chip; f32 MXU accumulate)
    x = x_ref[...].astype(w1_ref.dtype)
    h1 = jnp.dot(x, w1_ref[...], preferred_element_type=jnp.float32)
    h1 = jnp.maximum(h1 + b1_ref[...], 0.0).astype(w2_ref.dtype)
    # fc2 + ReLU
    h2 = jnp.dot(h1, w2_ref[...], preferred_element_type=jnp.float32)
    h2 = jnp.maximum(h2 + b2_ref[...], 0.0).astype(w3_ref.dtype)
    # fc3 + tanh   (tanh in f32 on the EUP slot, bf16 at the store)
    a = jnp.dot(h2, w3_ref[...], preferred_element_type=jnp.float32) + b3_ref[...]
    o_ref[...] = jnp.tanh(a).astype(o_ref.dtype)


def td3_actor_forward(state, params, n_actions, n_hid1=None, n_hid2=None,
                      *, trim=True, num_tc=None):
    """TD3ActorNetwork.forward.  state: (B, n_states) f32 -> actions.

    Returns (B, n_actions) bf16 if trim=True (module semantics), or the
    lane-padded (B, ceil(n_actions/128)*128) kernel output if trim=False
    (lets a jitted consumer slice lazily and skip one HLO).
    """
    w1, b1, w2, b2, w3, b3 = params
    n_states = w1.shape[0]
    h1p, h2p, ap = w1.shape[1], w2.shape[1], w3.shape[1]   # 128-padded widths
    n_hid1 = h1p if n_hid1 is None else n_hid1
    n_hid2 = h2p if n_hid2 is None else n_hid2

    B = state.shape[0]
    if num_tc is None:
        num_tc = _num_tensorcores()
    TB = _choose_batch_tile(B, num_tc)
    grid = (pl.cdiv(B, TB),)          # ragged last block: no host-side pad

    # Honest cost from real (unpadded) widths -> better XLA overlap.
    flops = 2 * B * (n_states * n_hid1 + n_hid1 * n_hid2 + n_hid2 * n_actions)
    bytes_accessed = (
        state.size * state.dtype.itemsize
        + sum(int(p.size) * p.dtype.itemsize for p in params)
        + B * ap * 2                   # bf16 output writeback
    )
    cost = pl.CostEstimate(
        flops=int(flops),
        transcendentals=int(B * n_actions),
        bytes_accessed=int(bytes_accessed),
    )

    out = pl.pallas_call(
        _actor_kernel,
        out_shape=jax.ShapeDtypeStruct((B, ap), jnp.bfloat16),
        grid=grid,
        in_specs=[
            pl.BlockSpec((TB, n_states), lambda i: (i, 0)),   # batch tile
            pl.BlockSpec((n_states, h1p), lambda i: (0, 0)),  # VMEM-resident weights
            pl.BlockSpec((1, h1p), lambda i: (0, 0)),
            pl.BlockSpec((h1p, h2p), lambda i: (0, 0)),
            pl.BlockSpec((1, h2p), lambda i: (0, 0)),
            pl.BlockSpec((h2p, ap), lambda i: (0, 0)),
            pl.BlockSpec((1, ap), lambda i: (0, 0)),
        ],
        out_specs=pl.BlockSpec((TB, ap), lambda i: (i, 0)),   # lane-dense slab
        compiler_params=pltpu.CompilerParams(
            dimension_semantics=("parallel",)),               # shards across v7x's 2 TCs
        cost_estimate=cost,
    )(state, w1, b1, w2, b2, w3, b3)

    return out[:, :n_actions] if trim else out


def init_params(key, n_states, n_actions, n_hid1, n_hid2, dtype=jnp.bfloat16):
    """PyTorch nn.Linear default init: U(-1/sqrt(fan_in), +1/sqrt(fan_in)).

    Weights stored as (in, out) (transposed vs. torch) and zero-padded along
    output/lane dims to multiples of 128 so every matmul and the final store
    are full-lane. Padding is inert: padded units have zero weight/bias,
    relu(0)=0, and contribute nothing downstream. Weights bf16, biases f32.
    """
    h1p = _round_up(n_hid1, 128)
    h2p = _round_up(n_hid2, 128)
    ap = _round_up(n_actions, 128)
    ks = jax.random.split(key, 6)

    def uni(k, shape, fan_in):
        bound = 1.0 / jnp.sqrt(float(fan_in))
        return jax.random.uniform(k, shape, jnp.float32, -bound, bound)

    def pad_to(a, shape):
        return jnp.zeros(shape, jnp.float32).at[: a.shape[0], : a.shape[1]].set(a)

    w1 = pad_to(uni(ks[0], (n_states, n_hid1), n_states), (n_states, h1p)).astype(dtype)
    b1 = pad_to(uni(ks[1], (1, n_hid1), n_states), (1, h1p))
    w2 = pad_to(uni(ks[2], (n_hid1, n_hid2), n_hid1), (h1p, h2p)).astype(dtype)
    b2 = pad_to(uni(ks[3], (1, n_hid2), n_hid1), (1, h2p))
    w3 = pad_to(uni(ks[4], (n_hid2, n_actions), n_hid2), (h2p, ap)).astype(dtype)
    b3 = pad_to(uni(ks[5], (1, n_actions), n_hid2), (1, ap))
    return (w1, b1, w2, b2, w3, b3)


if __name__ == "__main__":
    # Small shapes consistent with the module's forward (e.g. BipedalWalker-ish).
    batch, n_states, n_actions, n_hid1, n_hid2 = 2, 24, 4, 32, 32

    key = jax.random.PRNGKey(0)
    k_state, k_params = jax.random.split(key)

    state = jax.random.normal(k_state, (batch, n_states), jnp.float32)
    params = init_params(k_params, n_states, n_actions, n_hid1, n_hid2)

    act = td3_actor_forward(state, params, n_actions, n_hid1, n_hid2)
    jax.block_until_ready(act)

    # Pure-JAX reference of the same bf16-weight / f32-accumulate math.
    w1, b1, w2, b2, w3, b3 = params
    x = state.astype(w1.dtype)
    h1 = jnp.maximum(jnp.dot(x, w1, preferred_element_type=jnp.float32) + b1, 0.0).astype(w2.dtype)
    h2 = jnp.maximum(jnp.dot(h1, w2, preferred_element_type=jnp.float32) + b2, 0.0).astype(w3.dtype)
    ref = jnp.tanh(jnp.dot(h2, w3, preferred_element_type=jnp.float32) + b3)[:, :n_actions]

    assert act.shape == (batch, n_actions)
    act_f32 = act.astype(jnp.float32)
    assert bool(jnp.all(jnp.abs(act_f32) <= 1.0))
    assert jnp.allclose(act_f32, ref, atol=2e-2), "mismatch vs reference"

    # TODO(synk): optimizer (Adam), checkpoint save/load, and device placement
    # from the PyTorch module are host-side concerns, not kernel work.
    print("KERNEL_OK")
</pallas_src>

<mosaic_0001>
module attributes {stable_mosaic.version = 11 : i64} {
  func.func @_actor_kernel(%arg0: i32, %arg1: memref<16x24xf32, #tpu.memory_space<vmem>>, %arg2: memref<24x128xbf16, #tpu.memory_space<vmem>>, %arg3: memref<1x128xf32, #tpu.memory_space<vmem>>, %arg4: memref<128x128xbf16, #tpu.memory_space<vmem>>, %arg5: memref<1x128xf32, #tpu.memory_space<vmem>>, %arg6: memref<128x128xbf16, #tpu.memory_space<vmem>>, %arg7: memref<1x128xf32, #tpu.memory_space<vmem>>, %arg8: memref<16x128xbf16, #tpu.memory_space<vmem>>) attributes {dimension_semantics = [#tpu.dimension_semantics<parallel>], iteration_bounds = array<i64: 1>, scalar_prefetch = 0 : i64, scratch_operands = 0 : i64, tpu.core_type = #tpu.core_type<tc>, window_params = [{transform_indices = @transform_0, window_bounds = array<i64: 16, 24>}, {pipeline_mode = #tpu.pipeline_mode<synchronous>, transform_indices = @transform_1, window_bounds = array<i64: 24, 128>}, {pipeline_mode = #tpu.pipeline_mode<synchronous>, transform_indices = @transform_2, window_bounds = array<i64: 1, 128>}, {pipeline_mode = #tpu.pipeline_mode<synchronous>, transform_indices = @transform_3, window_bounds = array<i64: 128, 128>}, {pipeline_mode = #tpu.pipeline_mode<synchronous>, transform_indices = @transform_4, window_bounds = array<i64: 1, 128>}, {pipeline_mode = #tpu.pipeline_mode<synchronous>, transform_indices = @transform_5, window_bounds = array<i64: 128, 128>}, {pipeline_mode = #tpu.pipeline_mode<synchronous>, transform_indices = @transform_6, window_bounds = array<i64: 1, 128>}, {transform_indices = @transform_7, window_bounds = array<i64: 16, 128>}]} {
    %c0 = arith.constant 0 : index
    %c0_0 = arith.constant 0 : index
    %0 = vector.load %arg1[%c0, %c0_0] : memref<16x24xf32, #tpu.memory_space<vmem>>, vector<16x24xf32>
    %1 = arith.truncf %0 : vector<16x24xf32> to vector<16x24xbf16>
    %c0_1 = arith.constant 0 : index
    %c0_2 = arith.constant 0 : index
    %2 = vector.load %arg2[%c0_1, %c0_2] : memref<24x128xbf16, #tpu.memory_space<vmem>>, vector<24x128xbf16>
    %cst = arith.constant dense<0.000000e+00> : vector<16x128xf32>
    %3 = tpu.matmul %1, %2, %cst {dimension_numbers = #tpu.dot_dimension_numbers<[1], [0], [0], [1], [0, 0, 1, 1], [], []>} : vector<16x24xbf16>, vector<24x128xbf16>, vector<16x128xf32> -> vector<16x128xf32>
    %c0_3 = arith.constant 0 : index
    %c0_4 = arith.constant 0 : index
    %4 = vector.load %arg3[%c0_3, %c0_4] : memref<1x128xf32, #tpu.memory_space<vmem>>, vector<1x128xf32>
    %5 = vector.broadcast %4 : vector<1x128xf32> to vector<16x128xf32>
    %6 = arith.addf %3, %5 : vector<16x128xf32>
    %cst_5 = arith.constant 0.000000e+00 : f32
    %7 = vector.broadcast %cst_5 : f32 to vector<16x128xf32>
    %8 = arith.maximumf %6, %7 : vector<16x128xf32>
    %9 = arith.truncf %8 : vector<16x128xf32> to vector<16x128xbf16>
    %c0_6 = arith.constant 0 : index
    %c0_7 = arith.constant 0 : index
    %10 = vector.load %arg4[%c0_6, %c0_7] : memref<128x128xbf16, #tpu.memory_space<vmem>>, vector<128x128xbf16>
    %cst_8 = arith.constant dense<0.000000e+00> : vector<16x128xf32>
    %11 = tpu.matmul %9, %10, %cst_8 {dimension_numbers = #tpu.dot_dimension_numbers<[1], [0], [0], [1], [0, 0, 1, 1], [], []>} : vector<16x128xbf16>, vector<128x128xbf16>, vector<16x128xf32> -> vector<16x128xf32>
    %c0_9 = arith.constant 0 : index
    %c0_10 = arith.constant 0 : index
    %12 = vector.load %arg5[%c0_9, %c0_10] : memref<1x128xf32, #tpu.memory_space<vmem>>, vector<1x128xf32>
    %13 = vector.broadcast %12 : vector<1x128xf32> to vector<16x128xf32>
    %14 = arith.addf %11, %13 : vector<16x128xf32>
    %cst_11 = arith.constant 0.000000e+00 : f32
    %15 = vector.broadcast %cst_11 : f32 to vector<16x128xf32>
    %16 = arith.maximumf %14, %15 : vector<16x128xf32>
    %17 = arith.truncf %16 : vector<16x128xf32> to vector<16x128xbf16>
    %c0_12 = arith.constant 0 : index
    %c0_13 = arith.constant 0 : index
    %18 = vector.load %arg6[%c0_12, %c0_13] : memref<128x128xbf16, #tpu.memory_space<vmem>>, vector<128x128xbf16>
    %cst_14 = arith.constant dense<0.000000e+00> : vector<16x128xf32>
    %19 = tpu.matmul %17, %18, %cst_14 {dimension_numbers = #tpu.dot_dimension_numbers<[1], [0], [0], [1], [0, 0, 1, 1], [], []>} : vector<16x128xbf16>, vector<128x128xbf16>, vector<16x128xf32> -> vector<16x128xf32>
    %c0_15 = arith.constant 0 : index
    %c0_16 = arith.constant 0 : index
    %20 = vector.load %arg7[%c0_15, %c0_16] : memref<1x128xf32, #tpu.memory_space<vmem>>, vector<1x128xf32>
    %21 = vector.broadcast %20 : vector<1x128xf32> to vector<16x128xf32>
    %22 = arith.addf %19, %21 : vector<16x128xf32>
    %23 = math.tanh %22 : vector<16x128xf32>
    %24 = arith.truncf %23 : vector<16x128xf32> to vector<16x128xbf16>
    %c0_17 = arith.constant 0 : index
    %c0_18 = arith.constant 0 : index
    %25 = vector.load %arg8[%c0_17, %c0_18] : memref<16x128xbf16, #tpu.memory_space<vmem>>, vector<16x128xbf16>
    tpu.vector_store %arg8[%c0_17, %c0_18], %24 {strides = array<i32>} : memref<16x128xbf16, #tpu.memory_space<vmem>>, vector<16x128xbf16>,
    return
  }
  func.func @transform_0(%arg0: i32) -> (i32, i32) {
    %c0_i32 = arith.constant 0 : i32
    %c0_i32_0 = arith.constant 0 : i32
    return %arg0, %c0_i32 : i32, i32
  }
  func.func @transform_1(%arg0: i32) -> (i32, i32) {
    %c0_i32 = arith.constant 0 : i32
    %c0_i32_0 = arith.constant 0 : i32
    %c0_i32_1 = arith.constant 0 : i32
    return %c0_i32, %c0_i32_0 : i32, i32
  }
  func.func @transform_2(%arg0: i32) -> (i32, i32) {
    %c0_i32 = arith.constant 0 : i32
    %c0_i32_0 = arith.constant 0 : i32
    %c0_i32_1 = arith.constant 0 : i32
    return %c0_i32, %c0_i32_0 : i32, i32
  }
  func.func @transform_3(%arg0: i32) -> (i32, i32) {
    %c0_i32 = arith.constant 0 : i32
    %c0_i32_0 = arith.constant 0 : i32
    %c0_i32_1 = arith.constant 0 : i32
    return %c0_i32, %c0_i32_0 : i32, i32
  }
  func.func @transform_4(%arg0: i32) -> (i32, i32) {
    %c0_i32 = arith.constant 0 : i32
    %c0_i32_0 = arith.constant 0 : i32
    %c0_i32_1 = arith.constant 0 : i32
    return %c0_i32, %c0_i32_0 : i32, i32
  }
  func.func @transform_5(%arg0: i32) -> (i32, i32) {
    %c0_i32 = arith.constant 0 : i32
    %c0_i32_0 = arith.constant 0 : i32
    %c0_i32_1 = arith.constant 0 : i32
    return %c0_i32, %c0_i32_0 : i32, i32
  }
  func.func @transform_6(%arg0: i32) -> (i32, i32) {
    %c0_i32 = arith.constant 0 : i32
    %c0_i32_0 = arith.constant 0 : i32
    %c0_i32_1 = arith.constant 0 : i32
    return %c0_i32, %c0_i32_0 : i32, i32
  }
  func.func @transform_7(%arg0: i32) -> (i32, i32) {
    %c0_i32 = arith.constant 0 : i32
    %c0_i32_0 = arith.constant 0 : i32
    return %arg0, %c0_i32 : i32, i32
  }
}

</mosaic_0001>

<bundles_post_ra>
// kernel: tpu_custom_call.1
= control target key start
LH: loop header
LB: loop body
LE: loop exit
PB: predicated region body
PF: predicated region fallthrough
CT: control target
= control target key end

     0   :  { %12 = vsyncpa [#allocation3], 0  ;;  %s885_s0 = inlined_call_operand.hbm [shape: f32[2,24], index: 0, kind: input, shape index: {}]   ;;  %s886_s1 = inlined_call_operand.hbm [shape: bf16[24,128], index: 1, kind: input, shape index: {}]   ;;  %s887_s2 = inlined_call_operand.vmem [shape: f32[1,128], index: 2, kind: input, shape index: {}]   ;;  %s888_s3 = inlined_call_operand.hbm [shape: bf16[128,128], index: 3, kind: input, shape index: {}]   ;;  %s889_s4 = inlined_call_operand.vmem [shape: f32[1,128], index: 4, kind: input, shape index: {}]   ;;  %s890_s5 = inlined_call_operand.hbm [shape: bf16[128,128], index: 5, kind: input, shape index: {}]   ;;  %s891_s6 = inlined_call_operand.vmem [shape: f32[1,128], index: 6, kind: input, shape index: {}]   ;;  %s892_s7 = inlined_call_operand.hbm [shape: bf16[2,128], index: 7, kind: output, shape index: {}]  }
   0x1   :  { %13 = vsyncpa [#allocation6], 0 }
   0x2   :  { %14 = vsyncpa [#allocation9], 0 }
   0x3   :  { %15 = vsyncpa [#allocation4], 0 }
   0x4   :  { %20 = vsyncadd [#allocation3], 224  ;;  %s722_s24 = smov [#allocation5]   ;;  %s604_s28 = scalar_lea.hbm %s886_s1, 192 }
   0x5   :  { %s33_s25 = sshll.u32 %s722_s24, 4  ;;  %p605_p0 = scmp.ne.s32.totalorder %s886_s1, %s604_s28  ;;  %s34_s25 = int_to_ptr.vmem [resolvable:$true] %s33_s25 }
   0x6   :  { %p608_p1 = scmp.lt.u32.totalorder %s604_s28, %s886_s1 }
   0x8   :  { %p610_p2 = pnand %p608_p1, %p605_p0 }
   0xa   :  { %613 = shalt.err (!%p610_p2)
}
   0xb   :  { %s614_s10 = scalar_lea.vmem %s34_s25, 192  ;;  %p619_p4 = scmp.lt.s32.totalorder %s34_s25, %s34_s25 }
   0xc   :  { %p615_p3 = scmp.ne.s32.totalorder %s34_s25, %s614_s10  ;;  %p620_p5 = scmp.lt.s32.totalorder %s614_s10, %s614_s10 }
   0xe   :  { %p621_p6 = por %p620_p5, %p619_p4 }
  0x10   :  { %p622_p7 = pnand %p621_p6, %p615_p3 }
  0x12   :  { %625 = shalt.err (!%p622_p7)
}
  0x13   :  { %s723_s11 = smov 64   ;;  %s724_s12 = smov 4  }
  0x14   :  { %39 = dma.hbm_to_vmem [thread:$0]  %s886_s1, 192, %s34_s25, [#allocation6], %s723_s11, %s723_s11, %s724_s12  }
  0x15   :  { %s725_s15 = smov [#allocation2]   ;;  %s626_s19 = scalar_lea.hbm %s885_s0, 32 }
  0x16   :  { %s21_s16 = sshll.u32 %s725_s15, 4  ;;  %p627_p8 = scmp.ne.s32.totalorder %s885_s0, %s626_s19  ;;  %s22_s16 = int_to_ptr.vmem [resolvable:$true] %s21_s16 }
  0x17   :  { %p630_p9 = scmp.lt.u32.totalorder %s626_s19, %s885_s0 }
  0x19   :  { %p632_p10 = pnand %p630_p9, %p627_p8 }
  0x1b   :  { %635 = shalt.err (!%p632_p10)
}
  0x1c   :  { %s636_s24 = scalar_lea.vmem %s22_s16, 32  ;;  %s640_s1 = scalar_lea.vmem %s22_s16, 256 }
  0x1d   :  { %p637_p11 = scmp.ne.s32.totalorder %s22_s16, %s636_s24  ;;  %p641_p12 = scmp.lt.s32.totalorder %s22_s16, %s22_s16 }
  0x1e   :  { %p642_p13 = scmp.lt.s32.totalorder %s640_s1, %s636_s24 }
  0x20   :  { %p643_p0 = por %p642_p13, %p641_p12 }
  0x22   :  { %p644_p1 = pnand %p643_p0, %p637_p11 }
  0x24   :  { %647 = shalt.err (!%p644_p1)
}
  0x25   :  { %s726_s25 = smov 32   ;;  %s727_s26 = smov 2  }
  0x26   :  { %27 = dma.hbm_to_vmem [thread:$0]  %s885_s0, 32, %s22_s16, [#allocation3], %s726_s25, %s726_s25, %s727_s26  }
  0x27   :  { %s728_s29 = smov [#allocation7]   ;;  %s729_s8 = smov [#allocation8]  }
  0x28   :  { %s47_s30 = sshll.u32 %s728_s29, 4  ;;  %s61_s9 = sshll.u32 %s729_s8, 4  ;;  %s48_s30 = int_to_ptr.vmem [resolvable:$true] %s47_s30  ;;  %s803_s9 = int_to_ptr.vmem [resolvable:$true] %s61_s9 }
  0x29   :  { %s648_s14 = scalar_lea.hbm %s888_s3, 1024 }
  0x2a   :  { %p649_p2 = scmp.ne.s32.totalorder %s888_s3, %s648_s14  ;;  %p652_p3 = scmp.lt.u32.totalorder %s648_s14, %s888_s3 }
  0x2c   :  { %p654_p4 = pnand %p652_p3, %p649_p2 }
  0x2e   :  { %657 = shalt.err (!%p654_p4)
}
  0x2f   :  { %s658_s0 = scalar_lea.vmem %s48_s30, 1024  ;;  %p663_p6 = scmp.lt.s32.totalorder %s48_s30, %s48_s30 }
  0x30   :  { %p659_p5 = scmp.ne.s32.totalorder %s48_s30, %s658_s0  ;;  %p664_p7 = scmp.lt.s32.totalorder %s658_s0, %s658_s0 }
  0x32   :  { %p665_p8 = por %p664_p7, %p663_p6 }
  0x34   :  { %p666_p9 = pnand %p665_p8, %p659_p5 }
  0x36   :  { %669 = shalt.err (!%p666_p9)
}
  0x37   :  { %53 = dma.hbm_to_vmem [thread:$0]  %s888_s3, 1024, %s48_s30, [#allocation6], %s723_s11, %s723_s11, %s724_s12  }
  0x38   :  { %s670_s23 = scalar_lea.hbm %s890_s5, 1024 }
  0x39   :  { %p671_p10 = scmp.ne.s32.totalorder %s890_s5, %s670_s23  ;;  %p674_p11 = scmp.lt.u32.totalorder %s670_s23, %s890_s5 }
  0x3b   :  { %p676_p12 = pnand %p674_p11, %p671_p10 }
  0x3d   :  { %679 = shalt.err (!%p676_p12)
}
  0x3e   :  { %s680_s27 = scalar_lea.vmem %s803_s9, 1024  ;;  %p685_p0 = scmp.lt.s32.totalorder %s803_s9, %s803_s9 }
  0x3f   :  { %p681_p13 = scmp.ne.s32.totalorder %s803_s9, %s680_s27  ;;  %p686_p1 = scmp.lt.s32.totalorder %s680_s27, %s680_s27 }
  0x41   :  { %p687_p2 = por %p686_p1, %p685_p0 }
  0x43   :  { %p688_p3 = pnand %p687_p2, %p681_p13 }
  0x45   :  { %691 = shalt.err (!%p688_p3)
}
  0x46   :  { %67 = dma.hbm_to_vmem [thread:$0]  %s890_s5, 1024, %s803_s9, [#allocation9], %s723_s11, %s723_s11, %s724_s12  }
  0x47   :  { %714 = dma.done.wait [#allocation3], 256  }
  0x48   :  { %715 = vsyncadd [#allocation3], 4294967040 }
  0x49   :  { %716 = dma.done.wait [#allocation6], 1216  }
  0x4a   :  { %717 = vsyncadd [#allocation6], 4294966080 }
  0x4b   :  { %718 = dma.done.wait [#allocation9], 1024  }
  0x4c   :  { %719 = vsyncadd [#allocation9], 4294966272  ;;  %v730_v0 = vmov 0.0   ;;  %vm731_vm0 = vmmov 0   ;;  %v582_v1 = vld [vmem:[#allocation5] sm:$0xff]   ;;  %vm109_vm1 = vcmask 1043456   ;;  %v392_v52 = vlaneseq }
  0x4d   :  { %520 = vmatprep.subr.bf16.mxu0 %v730_v0  ;;  %524 = vmatprep.mubr.msk.bf16.mxu0 %vm731_vm0, %v730_v0  ;;  %v583_v2 = vld [vmem:[#allocation5 + $0x8] ss:$0 sps:$4 sm:$0xff]   ;;  %v83_v3 = vld [vmem:[#allocation2] sm:$0xff]  ;;  %v84_v4 = vld [vmem:[#allocation2 + $0x8] sm:$0xff]  ;;  %vm105_vm2 = vcmask 195584  }
  0x4e   :  { %528 = vmatprep.subr.bf16.mxu1 %v730_v0  ;;  %544 = vmatprep.mubr.msk.bf16.mxu1 %vm731_vm0, %v730_v0  ;;  %v111_v5 = vsel %vm109_vm1, %v583_v2, 0  ;;  %v584_v6 = vld [vmem:[#allocation7] sm:$0xff]   ;;  %v85_v7 = vpack.c.bf16 %v84_v4, %v83_v3  ;;  %v585_v8 = vld [vmem:[#allocation7 + $0x8] sm:$0xff]   ;;  %v586_v9 = vld [vmem:[#allocation7 + $0x10] sm:$0xff]   ;;  %v732_v50 = vmov 1966171168  }
  0x4f   :  { %521 = vmatpush3.bf16.msra.mxu0 %v582_v1  ;;  %529 = vmatpush3.bf16.msra.mxu1 %v584_v6  ;;  %v587_v10 = vld [vmem:[#allocation7 + $0x18] sm:$0xff]   ;;  %v588_v11 = vld [vmem:[#allocation7 + $0x20] sm:$0xff]   ;;  %v589_v12 = vld [vmem:[#allocation7 + $0x28] sm:$0xff]   ;;  %v390_v51 = vunpack.c.l.s4 %v732_v50  ;;  %v393_v54 = vshrl.u32 %v392_v52, 7 }
  0x50   :  { %522 = vmatprep.subr.bf16.mxu0 %v730_v0  ;;  %530 = vmatprep.subr.bf16.mxu1 %v730_v0  ;;  %v590_v13 = vld [vmem:[#allocation7 + $0x30] sm:$0xff]   ;;  %v591_v14 = vld [vmem:[#allocation7 + $0x38] sm:$0xff]   ;;  %v592_v15 = vld [vmem:[#allocation8] sm:$0xff]  }
  0x51   :  { %v593_v16 = vld [vmem:[#allocation8 + $0x8] sm:$0xff]   ;;  %v594_v17 = vld [vmem:[#allocation8 + $0x10] sm:$0xff]   ;;  %v595_v18 = vld [vmem:[#allocation8 + $0x18] sm:$0xff]   ;;  %v391_v53 = vunpack.c.0.s8 %v390_v51 }
  0x52   :  { %v596_v19 = vld [vmem:[#allocation8 + $0x20] sm:$0xff]   ;;  %v597_v20 = vld [vmem:[#allocation8 + $0x28] sm:$0xff]   ;;  %v598_v31 = vld [vmem:[#allocation8 + $0x30] sm:$0xff]  }
  0x53   :  { %523 = vmatpush3.bf16.msra.mxu0 %v111_v5  ;;  %531 = vmatpush3.bf16.msra.mxu1 %v585_v8  ;;  %v472_v21 = vld [vmem:[%s887_s2] ss:$0 sm:$0xff]  ;;  %v599_v32 = vld [vmem:[#allocation8 + $0x38] sm:$0xff]   ;;  %v394_v56 = vsub.s32 %v391_v53, %v393_v54 }
  0x54   :  { %548 = vmatprep.subr.bf16.mxu0 %v730_v0  ;;  %532 = vmatprep.subr.bf16.mxu1 %v730_v0  ;;  %v476_v33 = vld [vmem:[%s889_s4] ss:$0 sm:$0xff] }
  0x55   :  { %v485_v43 = vld [vmem:[%s891_s6] ss:$0 sm:$0xff] }
  0x56   :  { %525 = vmatmul.mubr.msk.bf16.vlgmr.msra.gmra.mrb[0].mxu0 %vm105_vm2, %v85_v7 }
  0x57   :  { %564 = vmatprep.mubr.msk.bf16.mxu0 %vm731_vm0, %v730_v0  ;;  %533 = vmatpush3.bf16.msra.mxu1 %v586_v9 }
  0x58   :  { %534 = vmatprep.subr.bf16.mxu1 %v730_v0  ;;  %549 = vmatpush3.bf16.msra.mxu0 %v592_v15 }
  0x59   :  { %550 = vmatprep.subr.bf16.mxu0 %v730_v0 }
  0x5b   :  { %535 = vmatpush3.bf16.msra.mxu1 %v587_v10 }
  0x5c   :  { %536 = vmatprep.subr.bf16.mxu1 %v730_v0  ;;  %551 = vmatpush3.bf16.msra.mxu0 %v593_v16 }
  0x5d   :  { %552 = vmatprep.subr.bf16.mxu0 %v730_v0 }
  0x5f   :  { %537 = vmatpush3.bf16.msra.mxu1 %v588_v11 }
  0x60   :  { %538 = vmatprep.subr.bf16.mxu1 %v730_v0  ;;  %553 = vmatpush3.bf16.msra.mxu0 %v594_v17 }
  0x61   :  { %554 = vmatprep.subr.bf16.mxu0 %v730_v0 }
  0x63   :  { %539 = vmatpush3.bf16.msra.mxu1 %v589_v12 }
  0x64   :  { %540 = vmatprep.subr.bf16.mxu1 %v730_v0  ;;  %555 = vmatpush3.bf16.msra.mxu0 %v595_v18 }
  0x65   :  { %556 = vmatprep.subr.bf16.mxu0 %v730_v0 }
  0x67   :  { %541 = vmatpush3.bf16.msra.mxu1 %v590_v13 }
  0x68   :  { %542 = vmatprep.subr.bf16.mxu1 %v730_v0  ;;  %557 = vmatpush3.bf16.msra.mxu0 %v596_v19 }
  0x69   :  { %558 = vmatprep.subr.bf16.mxu0 %v730_v0 }
  0x6b   :  { %543 = vmatpush3.bf16.msra.mxu1 %v591_v14 }
  0x6c   :  { %559 = vmatpush3.bf16.msra.mxu0 %v597_v20 }
  0x6d   :  { %560 = vmatprep.subr.bf16.mxu0 %v730_v0 }
  0x70   :  { %561 = vmatpush3.bf16.msra.mxu0 %v598_v31 }
  0x71   :  { %562 = vmatprep.subr.bf16.mxu0 %v730_v0 }
  0x74   :  { %563 = vmatpush3.bf16.msra.mxu0 %v599_v32 }
 0x129   :  { %v147_v22 = vpop.f32.mrb[0].mxu0 }
 0x12a   :  { %v148_v23 = vadd.f32 %v472_v21, %v147_v22  ;;  %v526_v24 = vpop.f32.mrb[1].mxu0 }
 0x12b   :  { %v150_v25 = vpop.f32.mrb[2].mxu0 }
 0x12c   :  { %v151_v26 = vadd.f32 %v472_v21, %v150_v25  ;;  %v527_v27 = vpop.f32.mrb[3].mxu0  ;;  %v154_v28 = vmax.f32 %v148_v23, 0.0 }
 0x12e   :  { %v155_v29 = vmax.f32 %v151_v26, 0.0 }
 0x130   :  { %v156_v30 = vpack.c.bf16 %v155_v29, %v154_v28 }
 0x132   :  { %545 = vmatmul.mubr.bf16.vlgmr.msra.gmra.mrb[0].mxu1 %v156_v30 }
 0x205   :  { %v262_v34 = vpop.f32.mrb[0].mxu1 }
 0x206   :  { %v263_v35 = vadd.f32 %v476_v33, %v262_v34  ;;  %v546_v36 = vpop.f32.mrb[1].mxu1 }
 0x207   :  { %v265_v37 = vpop.f32.mrb[2].mxu1 }
 0x208   :  { %v266_v38 = vadd.f32 %v476_v33, %v265_v37  ;;  %v547_v39 = vpop.f32.mrb[3].mxu1  ;;  %v269_v40 = vmax.f32 %v263_v35, 0.0 }
 0x20a   :  { %v270_v41 = vmax.f32 %v266_v38, 0.0 }
 0x20c   :  { %v271_v42 = vpack.c.bf16 %v270_v41, %v269_v40 }
 0x20e   :  { %565 = vmatmul.mubr.bf16.vlgmr.msra.gmra.mrb[4].mxu0 %v271_v42 }
 0x2e1   :  { %v377_v44 = vpop.f32.mrb[4].mxu0 }
 0x2e2   :  { %v378_v45 = vadd.f32 %v485_v43, %v377_v44  ;;  %v566_v46 = vpop.f32.mrb[5].mxu0 }
 0x2e3   :  { %v380_v47 = vpop.f32.mrb[6].mxu0 }
 0x2e4   :  { %v381_v48 = vadd.f32 %v485_v43, %v380_v47  ;;  %v567_v49 = vpop.f32.mrb[7].mxu0  ;;  %600 = vtanh.f32 %v378_v45 }
 0x2e6   :  { %602 = vtanh.f32 %v381_v48 }
 0x2ee   :  { %v601_v55 = vpop.eup %600 }
 0x2f0   :  { %v603_v57 = vpop.eup %602 }
 0x2f1   :  { %v386_v58 = vpack.c.bf16 %v603_v57, %v601_v55  ;;  %v494_v59 = vpack.c.bf16 %v603_v57, %v603_v57 }
 0x2f3   :  { %v395_v60 = vrot.slane %v386_v58, %v394_v56  ;;  %v402_v61 = vrot.slane %v494_v59, %v394_v56 }
 0x2f5   :  { %v403_v62 = vcombine.high %v395_v60, %v395_v60  ;;  %v404_v63 = vcombine.high %v402_v61, %v402_v61  ;;  %v411_v0 = vrot.slane %v395_v60, %v394_v56  ;;  %v418_v1 = vrot.slane %v402_v61, %v394_v56  ;;  %495 = vst.sshfl [vmem:[#allocation10] sm:$0x1 pattern:$0x73625140] %v395_v60 }
 0x2f6   :  { %497 = vst.sshfl [vmem:[#allocation10 + $0x4] sm:$0x1 pattern:$0x73625140] %v402_v61 }
 0x2f7   :  { %v425_v2 = vrot.slane %v403_v62, %v394_v56  ;;  %v432_v3 = vrot.slane %v404_v63, %v394_v56  ;;  %v433_v4 = vcombine.high %v411_v0, %v411_v0  ;;  %v434_v5 = vcombine.high %v418_v1, %v418_v1  ;;  %496 = vst.sshfl [vmem:[#allocation10 + $0x1] sm:$0x1 pattern:$0x73625140] %v403_v62 }
 0x2f8   :  { %498 = vst.sshfl [vmem:[#allocation10 + $0x5] sm:$0x1 pattern:$0x73625140] %v404_v63 }
 0x2f9   :  { %v435_v6 = vcombine.high %v425_v2, %v425_v2  ;;  %v436_v7 = vcombine.high %v432_v3, %v432_v3  ;;  %447 = vst [vmem:[#allocation10 + $0x2] sm:$0x1] %v433_v4  ;;  %451 = vst [vmem:[#allocation10 + $0x6] sm:$0x1] %v434_v5 }
 0x2fb   :  { %448 = vst [vmem:[#allocation10 + $0x3] sm:$0x1] %v435_v6  ;;  %452 = vst [vmem:[#allocation10 + $0x7] sm:$0x1] %v436_v7 }
 0x2fc   :  { %457 = vsyncadd [#allocation4], 112  ;;  %s733_s4 = smov [#allocation10]  }
 0x2fd   :  { %s458_s6 = sshll.u32 %s733_s4, 4  ;;  %s459_s6 = int_to_ptr.vmem [resolvable:$true] %s458_s6 }
 0x2fe   :  { %s692_s8 = scalar_lea.vmem %s459_s6, 16  ;;  %s696_s9 = scalar_lea.vmem %s459_s6, 128 }
 0x2ff   :  { %p693_p4 = scmp.ne.s32.totalorder %s459_s6, %s692_s8  ;;  %p697_p5 = scmp.lt.s32.totalorder %s459_s6, %s459_s6 }
 0x300   :  { %p698_p6 = scmp.lt.s32.totalorder %s696_s9, %s692_s8 }
 0x302   :  { %p699_p7 = por %p698_p6, %p697_p5 }
 0x304   :  { %p700_p8 = pnand %p699_p7, %p693_p4 }
 0x306   :  { %703 = shalt.err (!%p700_p8)
}
 0x307   :  { %s704_s14 = scalar_lea.hbm %s892_s7, 16 }
 0x308   :  { %p705_p9 = scmp.ne.s32.totalorder %s892_s7, %s704_s14  ;;  %p708_p10 = scmp.lt.u32.totalorder %s704_s14, %s892_s7 }
 0x30a   :  { %p710_p11 = pnand %p708_p10, %p705_p9 }
 0x30c   :  { %713 = shalt.err (!%p710_p11)
}
 0x30d   :  { %s734_s0 = smov 16   ;;  %s735_s16 = smov 1  }
 0x30e   :  { %464 = dma.vmem_to_hbm [thread:$0]  %s459_s6, 16, %s892_s7, [#allocation4], %s734_s0, %s734_s0, %s735_s16  }
 0x30f   :  { %720 = dma.done.wait [#allocation4], 128  }
 0x310   :  { %721 = vsyncadd [#allocation4], 4294967168 }
 0x311   :  { %468 = vsyncpa [#allocation3], 1 }
 0x312   :  { %469 = vsyncpa [#allocation6], 1 }
 0x313   :  { %470 = vsyncpa [#allocation9], 1 }
 0x314   :  { %471 = vsyncpa [#allocation4], 1 }

</bundles_post_ra>
